<compile_context>
chip_gen: v5e
topology: v5e:2x2
jax: 0.10.0
libtpu: 0.0.40
codegen_flags: <defaults>
</compile_context>

<pallas_src>
import jax
import jax.numpy as jnp
from jax.experimental import pallas as pl
from jax.experimental.pallas import tpu as pltpu


def _round_up(x, n):
    return ((x + n - 1) // n) * n


def _fc_kernel_fused(x_ref, w_ref, b_ref, o_ref):
    # Single K step: no scratch accumulator; bias fused into the store.
    acc = jnp.dot(x_ref[...], w_ref[...], preferred_element_type=jnp.float32)
    o_ref[...] = (acc + b_ref[...].astype(jnp.float32)).astype(o_ref.dtype)


def _fc_kernel_acc(x_ref, w_ref, b_ref, o_ref, acc_ref):
    # Multi K steps: f32 accumulator resident across the K grid axis.
    k = pl.program_id(2)

    @pl.when(k == 0)
    def _():
        acc_ref[...] = jnp.broadcast_to(
            b_ref[...].astype(jnp.float32), acc_ref.shape
        )

    acc_ref[...] += jnp.dot(
        x_ref[...], w_ref[...], preferred_element_type=jnp.float32
    )

    @pl.when(k == pl.num_programs(2) - 1)
    def _():
        o_ref[...] = acc_ref[...].astype(o_ref.dtype)


def field_component_forward(
    x,
    weight,
    bias,
    *,
    tile_m=1024,
    tile_n=512,
    tile_k=512,
    resident_weight_limit=16 << 20,
):
    """Apply the FieldComponent projection: [*bs, in_dim] -> [*bs, out_dim]."""
    in_dim, out_dim = weight.shape
    assert x.shape[-1] == in_dim

    batch_shape = x.shape[:-1]
    m = 1
    for d in batch_shape:
        m *= d
    x2d = x.reshape(m, in_dim)

    x_isz = jnp.dtype(x.dtype).itemsize
    w_isz = jnp.dtype(weight.dtype).itemsize
    o_isz = x_isz

    # --- per-generation VMEM budget ---------------------------------------
    try:
        vmem_cap = int(pltpu.get_tpu_info().vmem_capacity_bytes)
    except Exception:
        vmem_cap = 64 << 20  # conservative (v7x per-TC) fallback
    vmem_budget = int(0.7 * vmem_cap)

    # --- N handling --------------------------------------------------------
    pad_n = 0
    if out_dim % 128 == 0:
        n_eff = out_dim
        tn = min(_round_up(tile_n, 128), n_eff)
    elif out_dim <= 2048:
        # Keep the full ragged out_dim as the block (block dim == array dim is
        # legal); avoids weight padding and a post-kernel output slice pass.
        n_eff = out_dim
        tn = out_dim
    else:
        # Rare: large non-128-multiple out_dim.  Pad weight/bias once, slice
        # the output afterwards.
        # TODO(synk): hoist this pad to parameter setup for repeated forwards.
        pad_n = _round_up(out_dim, 128) - out_dim
        weight = jnp.pad(weight, ((0, 0), (0, pad_n)))
        bias = jnp.pad(bias, (0, pad_n))
        n_eff = out_dim + pad_n
        tn = min(_round_up(tile_n, 128), n_eff)
    bias2d = bias.reshape(1, n_eff)

    # --- K handling: prefer full-weight VMEM residency ----------------------
    weight_tile_bytes = 2 * in_dim * tn * w_isz  # double-buffered weight tile
    if weight_tile_bytes <= min(resident_weight_limit, vmem_budget // 3):
        tk = in_dim                    # weight resident; K grid collapses
    elif in_dim % 128 == 0:
        tk = min(_round_up(tile_k, 128), in_dim)
        while in_dim % tk != 0:        # only tile K when it divides exactly
            tk -= 128                  # (ragged K reads would be unmasked OOB)
    else:
        tk = in_dim                    # untiled K; tm shrink below fits VMEM

    grid_k = in_dim // tk

    # --- M tile: as large as the VMEM budget allows -------------------------
    tm = min(_round_up(tile_m, 8), _round_up(m, 8))

    def footprint(tm_):
        f = (
            2 * tm_ * tk * x_isz       # x tiles (double buffered)
            + 2 * tk * tn * w_isz      # weight tiles
            + 2 * 8 * tn * w_isz       # bias tiles (sublane-padded)
            + 2 * tm_ * tn * o_isz     # output tiles
        )
        if grid_k > 1:
            f += tm_ * tn * 4          # f32 accumulator scratch
        return f

    while tm > 8 and footprint(tm) > vmem_budget:
        tm = _round_up(tm // 2, 8)

    grid_m = pl.cdiv(m, tm)
    grid_n = pl.cdiv(n_eff, tn)

    vmem_limit = int(min(max(2 * footprint(tm), 32 << 20), vmem_budget))

    cost = pl.CostEstimate(
        flops=2 * m * in_dim * n_eff,
        transcendentals=0,
        bytes_accessed=(
            m * in_dim * x_isz + in_dim * n_eff * w_isz + m * n_eff * o_isz
        ),
    )

    if grid_k == 1:
        grid = (grid_m, grid_n)
        in_specs = [
            pl.BlockSpec((tm, tk), lambda i, j: (i, 0)),
            pl.BlockSpec((tk, tn), lambda i, j: (0, j)),
            pl.BlockSpec((1, tn), lambda i, j: (0, j)),
        ]
        out_specs = pl.BlockSpec((tm, tn), lambda i, j: (i, j))
        scratch_shapes = []
        kernel = _fc_kernel_fused
        dims = ("parallel", "parallel")
    else:
        grid = (grid_m, grid_n, grid_k)
        in_specs = [
            pl.BlockSpec((tm, tk), lambda i, j, k: (i, k)),
            pl.BlockSpec((tk, tn), lambda i, j, k: (k, j)),
            pl.BlockSpec((1, tn), lambda i, j, k: (0, j)),
        ]
        out_specs = pl.BlockSpec((tm, tn), lambda i, j, k: (i, j))
        scratch_shapes = [pltpu.VMEM((tm, tn), jnp.float32)]
        kernel = _fc_kernel_acc
        dims = ("parallel", "parallel", "arbitrary")

    out2d = pl.pallas_call(
        kernel,
        out_shape=jax.ShapeDtypeStruct((m, n_eff), x.dtype),
        grid_spec=pltpu.PrefetchScalarGridSpec(
            num_scalar_prefetch=0,
            grid=grid,
            in_specs=in_specs,
            out_specs=out_specs,
            scratch_shapes=scratch_shapes,
        ),
        compiler_params=pltpu.CompilerParams(
            dimension_semantics=dims,
            vmem_limit_bytes=vmem_limit,
        ),
        cost_estimate=cost,
    )(x2d, weight, bias2d)

    if pad_n:
        out2d = out2d[:, :out_dim]
    return out2d.reshape(*batch_shape, out_dim)


if __name__ == "__main__":
    key = jax.random.PRNGKey(0)

    # Case 1: lane-aligned out_dim, resident weight, single-K fused kernel.
    batch_shape = (2, 8)
    in_dim, out_dim = 32, 128
    k_x, k_w, k_b, key = jax.random.split(key, 4)
    x = jax.random.normal(k_x, (*batch_shape, in_dim), dtype=jnp.float32)
    weight = jax.random.normal(k_w, (in_dim, out_dim), dtype=jnp.float32) * 0.05
    bias = jax.random.normal(k_b, (out_dim,), dtype=jnp.float32) * 0.01

    out = jax.block_until_ready(field_component_forward(x, weight, bias))
    ref = (x.reshape(-1, in_dim) @ weight + bias).reshape(*batch_shape, out_dim)
    assert out.shape == (*batch_shape, out_dim)
    assert jnp.allclose(out, ref, atol=1e-5, rtol=1e-5)

    # Case 2: ragged M and non-128-multiple out_dim (full-N block, no padding,
    # masked tail-row stores).
    batch_shape2 = (3, 5)  # m = 15, not a multiple of 8
    in_dim2, out_dim2 = 20, 48
    k_x2, k_w2, k_b2, key = jax.random.split(key, 4)
    x2 = jax.random.normal(k_x2, (*batch_shape2, in_dim2), dtype=jnp.float32)
    weight2 = jax.random.normal(k_w2, (in_dim2, out_dim2), dtype=jnp.float32) * 0.05
    bias2 = jax.random.normal(k_b2, (out_dim2,), dtype=jnp.float32) * 0.01

    out2 = jax.block_until_ready(field_component_forward(x2, weight2, bias2))
    ref2 = (x2.reshape(-1, in_dim2) @ weight2 + bias2).reshape(
        *batch_shape2, out_dim2
    )
    assert out2.shape == (*batch_shape2, out_dim2)
    assert jnp.allclose(out2, ref2, atol=1e-5, rtol=1e-5)

    # Case 3: force the multi-K accumulator path (small shapes, residency
    # disabled) to exercise the bias-initialized accumulator kernel.
    batch_shape3 = (4, 4)
    in_dim3, out_dim3 = 256, 128
    k_x3, k_w3, k_b3, key = jax.random.split(key, 4)
    x3 = jax.random.normal(k_x3, (*batch_shape3, in_dim3), dtype=jnp.float32)
    weight3 = jax.random.normal(k_w3, (in_dim3, out_dim3), dtype=jnp.float32) * 0.05
    bias3 = jax.random.normal(k_b3, (out_dim3,), dtype=jnp.float32) * 0.01

    out3 = jax.block_until_ready(
        field_component_forward(
            x3, weight3, bias3, tile_k=128, resident_weight_limit=0
        )
    )
    ref3 = (x3.reshape(-1, in_dim3) @ weight3 + bias3).reshape(
        *batch_shape3, out_dim3
    )
    assert out3.shape == (*batch_shape3, out_dim3)
    assert jnp.allclose(out3, ref3, atol=1e-4, rtol=1e-5)

    print("KERNEL_OK")
</pallas_src>

<mosaic_0001>
module attributes {stable_mosaic.version = 11 : i64} {
  func.func @_fc_kernel_fused(%arg0: i32, %arg1: i32, %arg2: memref<16x32xf32, #tpu.memory_space<vmem>>, %arg3: memref<32x128xf32, #tpu.memory_space<vmem>>, %arg4: memref<1x128xf32, #tpu.memory_space<vmem>>, %arg5: memref<16x128xf32, #tpu.memory_space<vmem>>) attributes {dimension_semantics = [#tpu.dimension_semantics<parallel>, #tpu.dimension_semantics<parallel>], iteration_bounds = array<i64: 1, 1>, scalar_prefetch = 0 : i64, scratch_operands = 0 : i64, tpu.core_type = #tpu.core_type<tc>, window_params = [{transform_indices = @transform_0, window_bounds = array<i64: 16, 32>}, {transform_indices = @transform_1, window_bounds = array<i64: 32, 128>}, {transform_indices = @transform_2, window_bounds = array<i64: 1, 128>}, {transform_indices = @transform_3, window_bounds = array<i64: 16, 128>}]} {
    %c0 = arith.constant 0 : index
    %c0_0 = arith.constant 0 : index
    %0 = vector.load %arg2[%c0, %c0_0] : memref<16x32xf32, #tpu.memory_space<vmem>>, vector<16x32xf32>
    %c0_1 = arith.constant 0 : index
    %c0_2 = arith.constant 0 : index
    %1 = vector.load %arg3[%c0_1, %c0_2] : memref<32x128xf32, #tpu.memory_space<vmem>>, vector<32x128xf32>
    %cst = arith.constant dense<0.000000e+00> : vector<16x128xf32>
    %2 = tpu.matmul %0, %1, %cst {dimension_numbers = #tpu.dot_dimension_numbers<[1], [0], [0], [1], [0, 0, 1, 1], [], []>} : vector<16x32xf32>, vector<32x128xf32>, vector<16x128xf32> -> vector<16x128xf32>
    %c0_3 = arith.constant 0 : index
    %c0_4 = arith.constant 0 : index
    %3 = vector.load %arg4[%c0_3, %c0_4] : memref<1x128xf32, #tpu.memory_space<vmem>>, vector<1x128xf32>
    %4 = vector.broadcast %3 : vector<1x128xf32> to vector<16x128xf32>
    %5 = arith.addf %2, %4 : vector<16x128xf32>
    %c0_5 = arith.constant 0 : index
    %c0_6 = arith.constant 0 : index
    %6 = vector.load %arg5[%c0_5, %c0_6] : memref<16x128xf32, #tpu.memory_space<vmem>>, vector<16x128xf32>
    tpu.vector_store %arg5[%c0_5, %c0_6], %5 {strides = array<i32>} : memref<16x128xf32, #tpu.memory_space<vmem>>, vector<16x128xf32>,
    return
  }
  func.func @transform_0(%arg0: i32, %arg1: i32) -> (i32, i32) {
    %c0_i32 = arith.constant 0 : i32
    %c0_i32_0 = arith.constant 0 : i32
    return %arg0, %c0_i32 : i32, i32
  }
  func.func @transform_1(%arg0: i32, %arg1: i32) -> (i32, i32) {
    %c0_i32 = arith.constant 0 : i32
    %c0_i32_0 = arith.constant 0 : i32
    return %c0_i32, %arg1 : i32, i32
  }
  func.func @transform_2(%arg0: i32, %arg1: i32) -> (i32, i32) {
    %c0_i32 = arith.constant 0 : i32
    %c0_i32_0 = arith.constant 0 : i32
    return %c0_i32, %arg1 : i32, i32
  }
  func.func @transform_3(%arg0: i32, %arg1: i32) -> (i32, i32) {
    %c0_i32 = arith.constant 0 : i32
    return %arg0, %arg1 : i32, i32
  }
}

</mosaic_0001>

<bundles_post_ra>
// kernel: tpu_custom_call.1
= control target key start
LH: loop header
LB: loop body
LE: loop exit
PB: predicated region body
PF: predicated region fallthrough
CT: control target
= control target key end

     0   :  { %8 = vsyncpa [#allocation3], 0  ;;  %s245_s0 = inlined_call_operand.hbm [shape: f32[16,32], index: 0, kind: input, shape index: {}]   ;;  %s246_s1 = inlined_call_operand.hbm [shape: f32[32,128], index: 1, kind: input, shape index: {}]   ;;  %s247_s2 = inlined_call_operand.vmem [shape: f32[1,128], index: 2, kind: input, shape index: {}]   ;;  %s248_s3 = inlined_call_operand.hbm [shape: f32[16,128], index: 3, kind: output, shape index: {}]  }
   0x1   :  { %9 = vsyncpa [#allocation6], 0 }
   0x2   :  { %10 = vsyncpa [#allocation4], 0  ;;  %s15_s14 = sshll.u32 %s245_s0, 4  ;;  %s199_s15 = smov [#allocation2]   ;;  %s16_s14 = int_to_ptr.hbm [resolvable:$true] %s15_s14 }
   0x3   :  { %s17_s16 = sshll.u32 %s199_s15, 4  ;;  %s28_s19 = sshll.u32 %s246_s1, 4  ;;  %s18_s16 = int_to_ptr.vmem [resolvable:$true] %s17_s16  ;;  %s29_s19 = int_to_ptr.hbm [resolvable:$true] %s28_s19 }
   0x4   :  { %s200_s20 = smov 128   ;;  %s201_s21 = smov 8  }
   0x5   :  { %23 = dma.hbm_to_vmem [thread:$0]  %s16_s14, 256, %s18_s16, [#allocation3], %s200_s20, %s200_s20, %s201_s21  }
   0x6   :  { %s202_s22 = smov [#allocation5]  }
   0x7   :  { %s30_s23 = sshll.u32 %s202_s22, 4  ;;  %s31_s23 = int_to_ptr.vmem [resolvable:$true] %s30_s23 }
   0x8   :  { %36 = dma.hbm_to_vmem [thread:$0]  %s29_s19, 512, %s31_s23, [#allocation6], %s200_s20, %s200_s20, %s201_s21  }
   0x9   :  { %193 = dma.done.wait [#allocation3], 256  }
   0xa   :  { %194 = vsyncadd [#allocation3], 4294967040 }
   0xb   :  { %195 = dma.done.wait [#allocation6], 512  }
   0xc   :  { %196 = vsyncadd [#allocation6], 4294966784  ;;  %v52_v0 = vld [vmem:[#allocation5 + $0x18] sm:$0xff]  ;;  %v51_v1 = vld [vmem:[#allocation5 + $0x10] sm:$0xff]  ;;  %vm57_vm0 = vcmask 261120   ;;  %s203_s24 = smov [#allocation7]  }
   0xd   :  { %76 = vmatpush.msra.mxu0 %v52_v0  ;;  %111 = vmatpush.msra.mxu1 %v52_v0  ;;  %v50_v2 = vld [vmem:[#allocation5 + $0x8] sm:$0xff]  ;;  %v49_v3 = vld [vmem:[#allocation5] sm:$0xff]  ;;  %v47_v4 = vld [vmem:[#allocation2] sm:$0xff]  ;;  %s93_s25 = sshll.u32 %s203_s24, 4  ;;  %s95_s28 = sshll.u32 %s248_s3, 4  ;;  %s94_s25 = int_to_ptr.vmem [resolvable:$true] %s93_s25  ;;  %s96_s28 = int_to_ptr.hbm [resolvable:$true] %s95_s28 }
   0xe   :  { %v48_v5 = vld [vmem:[#allocation2 + $0x8] sm:$0xff]  ;;  %v120_v6 = vld [vmem:[%s247_s2] ss:$0 sm:$0xff] }
   0xf   :  { %77 = vmatpush.msra.mxu0 %v51_v1  ;;  %112 = vmatpush.msra.mxu1 %v51_v1 }
  0x11   :  { %78 = vmatpush.msra.mxu0 %v50_v2  ;;  %113 = vmatpush.msra.mxu1 %v50_v2 }
  0x13   :  { %79 = vmatpush.msra.mxu0 %v49_v3  ;;  %114 = vmatpush.msra.mxu1 %v49_v3 }
  0x14   :  { %109 = vmatmul.msk.f32.vlgmr.msra.gmra.mxu0 %vm57_vm0, %v47_v4  ;;  %110 = vmatmul.msk.f32.vlgmr.msra.gmra.mxu1 %vm57_vm0, %v48_v5 }
  0x91   :  { %v81_v7 = vpop.f32.mrf.mxu0  ;;  %v84_v8 = vpop.f32.mrf.mxu1 }
  0x92   :  { %v82_v9 = vadd.f32 %v120_v6, %v81_v7  ;;  %v85_v10 = vadd.f32 %v120_v6, %v84_v8 }
  0x94   :  { %87 = vst [vmem:[#allocation7] sm:$0xff] %v82_v9 }
  0x95   :  { %88 = vst [vmem:[#allocation7 + $0x8] sm:$0xff] %v85_v10 }
  0x96   :  { %101 = dma.vmem_to_hbm [thread:$0]  %s94_s25, 256, %s96_s28, [#allocation4], %s200_s20, %s200_s20, %s201_s21  }
  0x97   :  { %197 = dma.done.wait [#allocation4], 256  }
  0x98   :  { %198 = vsyncadd [#allocation4], 4294967040 }
  0x99   :  { %106 = vsyncpa [#allocation3], 1 }
  0x9a   :  { %107 = vsyncpa [#allocation6], 1 }
  0x9b   :  { %108 = vsyncpa [#allocation4], 1 }

</bundles_post_ra>
